<compile_context>
chip_gen: v7x
topology: tpu7x:2x2x1
jax: 0.10.0
libtpu: 0.0.40
codegen_flags: <defaults>
</compile_context>

<pallas_src>
import numpy as np
import jax
import jax.numpy as jnp
from jax.experimental import pallas as pl
from jax.experimental.pallas import tpu as pltpu


# ---------------------------------------------------------------------------
# Pallas kernel: one block-diagonal weight x stacked-basis matmul
# ---------------------------------------------------------------------------
def _blockdiag_matmul_kernel(w_ref, basis_ref, out_ref):
    # w_ref    : (Mtot, Kp)  bf16  block-diagonal weights (VMEM-resident)
    # basis_ref: (Kp,  Dt)   bf16  stacked basis tile (lane-dense)
    # out_ref  : (Mtot, Dt)  f32
    out_ref[...] = jnp.dot(w_ref[...], basis_ref[...],
                           preferred_element_type=jnp.float32)


def _round_up(a, b):
    return (a + b - 1) // b * b


def _num_basis(l_in, l_out, size, mode="compromise"):
    """Number of basis elements produced by gaussian_window_wrapper."""
    order_irreps = list(range(abs(l_in - l_out), l_in + l_out + 1))
    n_radial = size // 2 + 1
    if mode == "conservative":
        j_max_list = [0, 2, 4, 6, 8, 10, 12, 14][:n_radial]
    elif mode == "compromise":
        j_max_list = [0, 3, 5, 7, 9, 11, 13, 15][:n_radial]
    else:  # 'sfcnn'
        j_max_list = [0, 4, 6, 8, 10, 12, 14, 16][:n_radial]
    return sum(sum(1 for J in order_irreps if J <= jmax) for jmax in j_max_list)


# ---------------------------------------------------------------------------
# SE3Kernel in JAX / Pallas
# ---------------------------------------------------------------------------
class SE3KernelPallas:
    """JAX/Pallas port of se3cnn SE3Kernel (dyn_iso=False path)."""

    def __init__(self, Rs_in, Rs_out, size, key):
        self.size = size
        self.Rs_out = [(m, l) for m, l in Rs_out if m >= 1]
        self.Rs_in = [(m, l) for m, l in Rs_in if m >= 1]
        self.multiplicities_out = [m for m, _ in self.Rs_out]
        self.multiplicities_in = [m for m, _ in self.Rs_in]
        self.dims_out = [2 * l + 1 for _, l in self.Rs_out]
        self.dims_in = [2 * l + 1 for _, l in self.Rs_in]
        self.n_out = sum(m * d for m, d in zip(self.multiplicities_out, self.dims_out))
        self.n_in = sum(m * d for m, d in zip(self.multiplicities_in, self.dims_in))

        sum_mult_in = sum(self.multiplicities_in)
        s = size
        s3 = s * s * s

        # ---- per-block bases + weights (same math as torch dyn_iso=False) ----
        self.bases = {}        # (i, j) -> (b_el, d_out, d_in, s, s, s) f32 or None
        weights = []
        block_meta = []        # dicts with block geometry + offsets
        woff = 0               # offset into the flat weight vector
        row = 0                # row offset into the block-diagonal LHS / packed out
        col = 0                # col offset into the block-diagonal LHS / basis rows
        for i, (m_out, l_out) in enumerate(self.Rs_out):
            for j, (m_in, l_in) in enumerate(self.Rs_in):
                b_el = _num_basis(l_in, l_out, size)
                if b_el > 0:
                    d_out, d_in = 2 * l_out + 1, 2 * l_in + 1
                    key, kb, kw = jax.random.split(key, 3)
                    # TODO(synk): real spherical-harmonics / Clebsch-Gordan
                    # equivariant basis (se3cnn.SO3 / scipy unavailable);
                    # synthetic deterministic basis with the exact shape and
                    # normalization of the dyn_iso=False branch is used instead.
                    basis = jax.random.normal(
                        kb, (b_el, d_out, d_in, s, s, s), jnp.float32)
                    norms = jnp.linalg.norm(basis.reshape(b_el, -1), axis=1)
                    basis = basis / norms.reshape(-1, 1, 1, 1, 1, 1)
                    basis = basis * ((2 * l_out + 1) / (b_el * sum_mult_in)) ** 0.5
                    self.bases[(i, j)] = basis
                    weights.append(
                        jax.random.normal(kw, (m_out * m_in * b_el,), jnp.float32))
                    block_meta.append(dict(i=i, j=j, mo=m_out, mn=m_in,
                                           do=d_out, dn=d_in, b=b_el,
                                           woff=woff, row=row, col=col))
                    woff += m_out * m_in * b_el
                    row += m_out * m_in
                    col += b_el
                else:
                    self.bases[(i, j)] = None

        self.weight = (jnp.concatenate(weights) if weights
                       else jnp.zeros((0,), jnp.float32))
        self.n_blocks = len(block_meta)
        if self.n_blocks == 0:
            self._forward_jit = None
            return

        Mtot = row                                   # total LHS rows
        Ktot = col                                   # total contraction length
        Kp = max(8, _round_up(Ktot, 8))              # sublane-friendly K
        Dmax = max(m["do"] * m["dn"] * s3 for m in block_meta)
        Dp = _round_up(Dmax, 128)                    # lane-dense output width
        # Tile Dp only if it is very large, keeping per-step VMEM footprint
        # small enough for the default scoped-VMEM limit on all generations
        # (v5e/v6e 128 MiB, v7x 64 MiB physical / 32 MiB default scoped).
        DT_MAX = 2048                                # multiple of 128
        Dt = min(Dp, DT_MAX)
        n_d = pl.cdiv(Dp, Dt)
        Dp_pad = n_d * Dt

        # ---- constant stacked basis (Kp, Dp_pad), built ONCE, stored bf16 ----
        basis_np = np.zeros((Kp, Dp_pad), np.float32)
        for m in block_meta:
            flat = np.asarray(self.bases[(m["i"], m["j"])],
                              dtype=np.float32).reshape(m["b"], -1)
            basis_np[m["col"]:m["col"] + m["b"], :flat.shape[1]] = flat
        self._basis_stack = jnp.asarray(basis_np, dtype=jnp.bfloat16)

        flops = 2 * Mtot * Kp * Dp_pad
        bytes_accessed = Mtot * Kp * 2 + Kp * Dp_pad * 2 + Mtot * Dp_pad * 4
        cost = pl.CostEstimate(flops=flops, transcendentals=0,
                               bytes_accessed=bytes_accessed)

        fused_call = pl.pallas_call(
            _blockdiag_matmul_kernel,
            out_shape=jax.ShapeDtypeStruct((Mtot, Dp_pad), jnp.float32),
            grid=(n_d,),
            in_specs=[
                # Tiny weight LHS: constant block index -> DMA'd once, resident.
                pl.BlockSpec((Mtot, Kp), lambda d: (0, 0)),
                # Basis: lane-dense (Kp, Dt) tiles streamed across the grid.
                pl.BlockSpec((Kp, Dt), lambda d: (0, d)),
            ],
            out_specs=pl.BlockSpec((Mtot, Dt), lambda d: (0, d)),
            compiler_params=pltpu.CompilerParams(
                dimension_semantics=("parallel",)),
            cost_estimate=cost,
        )

        Rs_out_l = list(self.Rs_out)
        Rs_in_l = list(self.Rs_in)
        lookup = {(m["i"], m["j"]): m for m in block_meta}

        def _forward(weight, basis_stack):
            # Block-diagonal LHS from the flat weight vector: static slices +
            # pads only (no int32 gathers).
            rows = []
            for m in block_meta:
                wk = weight[m["woff"]:m["woff"] + m["mo"] * m["mn"] * m["b"]]
                wk = wk.reshape(m["mo"] * m["mn"], m["b"])
                wk = jnp.pad(wk, ((0, 0), (m["col"], Kp - m["col"] - m["b"])))
                rows.append(wk)
            w_bd = jnp.concatenate(rows, axis=0).astype(jnp.bfloat16)   # (Mtot, Kp)

            packed = fused_call(w_bd, basis_stack)                      # (Mtot, Dp_pad)

            # Static unpack: slice / reshape / transpose / concat (no gathers,
            # no extra materialized copy of `packed`).
            si = []
            for i, (mo, lo) in enumerate(Rs_out_l):
                do = 2 * lo + 1
                sj = []
                for j, (mn_, li) in enumerate(Rs_in_l):
                    dn = 2 * li + 1
                    m = lookup.get((i, j))
                    if m is None:
                        sj.append(jnp.zeros((mo * do, mn_ * dn, s, s, s),
                                            jnp.float32))
                    else:
                        blk = packed[m["row"]:m["row"] + mo * mn_, :do * dn * s3]
                        blk = blk.reshape(mo, mn_, do, dn, s, s, s)
                        blk = blk.transpose(0, 2, 1, 3, 4, 5, 6)   # uvijxyz -> uivjxyz
                        sj.append(blk.reshape(mo * do, mn_ * dn, s, s, s))
                si.append(jnp.concatenate(sj, axis=1))
            return jnp.concatenate(si, axis=0)

        self._forward_jit = jax.jit(_forward)

    # ----- forward = combination(weight) via the fused Pallas path -----
    def forward(self):
        if self.n_blocks == 0:
            return jnp.zeros((self.n_out, self.n_in,
                              self.size, self.size, self.size), jnp.float32)
        return self._forward_jit(self.weight, self._basis_stack)

    # ----- pure-JAX reference (mirrors the torch module block by block) -----
    def reference(self):
        weight = self.weight
        weight_index = 0
        si_kernels = []
        for i, mi in enumerate(self.multiplicities_out):
            i_diff = mi * self.dims_out[i]
            sj_kernels = []
            for j, mj in enumerate(self.multiplicities_in):
                j_diff = mj * self.dims_in[j]
                kij = self.bases[(i, j)]
                if kij is not None:
                    b_el = kij.shape[0]
                    w = weight[weight_index:weight_index + mi * mj * b_el]
                    w = w.reshape(mi, mj, b_el)
                    weight_index += mi * mj * b_el
                    ker = jnp.einsum("uvb,bijxyz->uivjxyz", w, kij,
                                     precision=jax.lax.Precision.HIGHEST)
                    ker = ker.reshape(i_diff, j_diff,
                                      self.size, self.size, self.size)
                else:
                    ker = jnp.zeros((i_diff, j_diff,
                                     self.size, self.size, self.size), jnp.float32)
                sj_kernels.append(ker)
            si_kernels.append(jnp.concatenate(sj_kernels, axis=1))
        kernel = jnp.concatenate(si_kernels, axis=0)
        assert weight_index == weight.shape[0]
        return kernel


# ---------------------------------------------------------------------------
if __name__ == "__main__":
    key = jax.random.PRNGKey(0)

    # Small but representative configuration:
    #   input  : 2 scalar (l=0) capsules + 1 vector (l=1) capsule -> n_in  = 5
    #   output : 2 scalar (l=0) capsules + 1 vector (l=1) capsule -> n_out = 5
    Rs_in = [(2, 0), (1, 1)]
    Rs_out = [(2, 0), (1, 1)]
    size = 5

    mod = SE3KernelPallas(Rs_in, Rs_out, size, key)

    kernel = jax.block_until_ready(mod.forward())

    expected_shape = (mod.n_out, mod.n_in, size, size, size)
    assert kernel.shape == expected_shape, (kernel.shape, expected_shape)

    ref = jax.block_until_ready(mod.reference())
    # Basis/weights are streamed through the MXU in bf16 (bandwidth-bound path);
    # validate against the float32 reference with a bf16-appropriate tolerance.
    max_err = float(jnp.max(jnp.abs(kernel - ref)))
    assert jnp.allclose(kernel, ref, atol=1e-2, rtol=5e-2), max_err

    print("KERNEL_OK")
</pallas_src>

<mosaic_0001>
module attributes {stable_mosaic.version = 11 : i64} {
  func.func @_blockdiag_matmul_kernel(%arg0: i32, %arg1: memref<9x16xbf16, #tpu.memory_space<vmem>>, %arg2: memref<16x1152xbf16, #tpu.memory_space<vmem>>, %arg3: memref<9x1152xf32, #tpu.memory_space<vmem>>) attributes {dimension_semantics = [#tpu.dimension_semantics<parallel>], iteration_bounds = array<i64: 1>, scalar_prefetch = 0 : i64, scratch_operands = 0 : i64, tpu.core_type = #tpu.core_type<tc>, window_params = [{pipeline_mode = #tpu.pipeline_mode<synchronous>, transform_indices = @transform_0, window_bounds = array<i64: 9, 16>}, {transform_indices = @transform_1, window_bounds = array<i64: 16, 1152>}, {transform_indices = @transform_2, window_bounds = array<i64: 9, 1152>}]} {
    %c0 = arith.constant 0 : index
    %c0_0 = arith.constant 0 : index
    %0 = vector.load %arg1[%c0, %c0_0] : memref<9x16xbf16, #tpu.memory_space<vmem>>, vector<9x16xbf16>
    %c0_1 = arith.constant 0 : index
    %c0_2 = arith.constant 0 : index
    %1 = vector.load %arg2[%c0_1, %c0_2] : memref<16x1152xbf16, #tpu.memory_space<vmem>>, vector<16x1152xbf16>
    %cst = arith.constant dense<0.000000e+00> : vector<9x1152xf32>
    %2 = tpu.matmul %0, %1, %cst {dimension_numbers = #tpu.dot_dimension_numbers<[1], [0], [0], [1], [0, 0, 1, 1], [], []>} : vector<9x16xbf16>, vector<16x1152xbf16>, vector<9x1152xf32> -> vector<9x1152xf32>
    %c0_3 = arith.constant 0 : index
    %c0_4 = arith.constant 0 : index
    %3 = vector.load %arg3[%c0_3, %c0_4] : memref<9x1152xf32, #tpu.memory_space<vmem>>, vector<9x1152xf32>
    tpu.vector_store %arg3[%c0_3, %c0_4], %2 {strides = array<i32>} : memref<9x1152xf32, #tpu.memory_space<vmem>>, vector<9x1152xf32>,
    return
  }
  func.func @transform_0(%arg0: i32) -> (i32, i32) {
    %c0_i32 = arith.constant 0 : i32
    %c0_i32_0 = arith.constant 0 : i32
    %c0_i32_1 = arith.constant 0 : i32
    return %c0_i32, %c0_i32_0 : i32, i32
  }
  func.func @transform_1(%arg0: i32) -> (i32, i32) {
    %c0_i32 = arith.constant 0 : i32
    %c0_i32_0 = arith.constant 0 : i32
    return %c0_i32, %arg0 : i32, i32
  }
  func.func @transform_2(%arg0: i32) -> (i32, i32) {
    %c0_i32 = arith.constant 0 : i32
    %c0_i32_0 = arith.constant 0 : i32
    return %c0_i32, %arg0 : i32, i32
  }
}

</mosaic_0001>

<bundles_post_ra>
// kernel: _forward.1
= control target key start
LH: loop header
LB: loop body
LE: loop exit
PB: predicated region body
PF: predicated region fallthrough
CT: control target
= control target key end

     0   :  { %7 = vsyncpa [#allocation3], 0  ;;  %s396_s9 = smov [#allocation2]   ;;  %s491_s0 = inlined_call_operand.vmem [shape: bf16[9,16], index: 0, kind: input, shape index: {}]   ;;  %s492_s1 = inlined_call_operand.hbm [shape: bf16[16,1152], index: 1, kind: input, shape index: {}]   ;;  %s493_s2 = inlined_call_operand.vmem [shape: f32[9,1152], index: 2, kind: output, shape index: {}]  }
   0x1   :  { %s15_s10 = sshll.u32 %s396_s9, 4  ;;  %s372_s13 = scalar_lea.hbm %s492_s1, 1152  ;;  %s16_s10 = int_to_ptr.vmem [resolvable:$true] %s15_s10 }
   0x2   :  { %p373_p0 = scmp.ne.s32.totalorder %s492_s1, %s372_s13  ;;  %p376_p1 = scmp.lt.u32.totalorder %s372_s13, %s492_s1 }
   0x4   :  { %p378_p2 = pnand %p376_p1, %p373_p0 }
   0x6   :  { %381 = shalt.err (!%p378_p2)
}
   0x7   :  { %s382_s18 = scalar_lea.vmem %s16_s10, 1152  ;;  %p387_p4 = scmp.lt.s32.totalorder %s16_s10, %s16_s10 }
   0x8   :  { %p383_p3 = scmp.ne.s32.totalorder %s16_s10, %s382_s18  ;;  %p388_p5 = scmp.lt.s32.totalorder %s382_s18, %s382_s18 }
   0xa   :  { %p389_p6 = por %p388_p5, %p387_p4 }
   0xc   :  { %p390_p7 = pnand %p389_p6, %p383_p3 }
   0xe   :  { %393 = shalt.err (!%p390_p7)
}
   0xf   :  { %s397_s19 = smov 576   ;;  %s398_s20 = smov 36  }
  0x10   :  { %21 = dma.hbm_to_vmem [thread:$0]  %s492_s1, 1152, %s16_s10, [#allocation3], %s397_s19, %s397_s19, %s398_s20  }
  0x11   :  { %394 = dma.done.wait [#allocation3], 1152  }
  0x12   :  { %395 = vsyncadd [#allocation3], 4294966144  ;;  %v399_v0 = vmov 0   ;;  %v358_v1 = vld [vmem:[#allocation2 + $0x4] ss:$36 sps:$4 sm:$0xff]   ;;  %vm89_vm0 = vcmask 130048  }
  0x13   :  { %125 = vmatprep.mubr.bf16.mxu0 %v399_v0  ;;  %168 = vmatprep.mubr.bf16.mxu1 %v399_v0  ;;  %v360_v2 = vld [vmem:[#allocation2] ss:$36 sps:$4 sm:$0xff]   ;;  %v362_v4 = vld [vmem:[#allocation2 + $0x10] ss:$36 sps:$4 sm:$0xff]   ;;  %v367_v7 = vld [vmem:[#allocation2 + $0x8] ss:$36 sps:$4 sm:$0xff]  }
  0x14   :  { %93 = vmatprep.subr.bf16.mxu0 %v358_v1  ;;  %v361_v3 = vld [vmem:[%s491_s0] sm:$0x1f]   ;;  %v364_v5 = vld [vmem:[#allocation2 + $0x14] ss:$36 sps:$4 sm:$0xff]   ;;  %v365_v6 = vld [vmem:[#allocation2 + $0xc] ss:$36 sps:$4 sm:$0xff]  }
  0x15   :  { %94 = vmatpush1.bf16.msra.mxu0 %v360_v2  ;;  %136 = vmatprep.subr.bf16.mxu1 %v365_v6  ;;  %v370_v8 = vld [vmem:[#allocation2 + $0x1c] ss:$36 sps:$4 sm:$0xff]   ;;  %v400_v10 = vmov 0.0   ;;  %vm401_vm1 = vmmov 0  }
  0x16   :  { %179 = vmatprep.subr.bf16.mxu0 %v364_v5  ;;  %137 = vmatpush1.bf16.msra.mxu1 %v367_v7  ;;  %v368_v9 = vld [vmem:[#allocation2 + $0x18] ss:$36 sps:$4 sm:$0xff]   ;;  %v371_v11 = vld [vmem:[#allocation2 + $0x20] ss:$36 sps:$4 sm:$0xff]  }
  0x17   :  { %222 = vmatprep.subr.bf16.mxu1 %v370_v8 }
  0x18   :  { %339 = vmatmul.mubr.msk.bf16.vlgmr.msra.gmra.mrb[0].mxu0 %vm89_vm0, %v361_v3 }
  0x19   :  { %180 = vmatpush1.bf16.msra.mxu0 %v362_v4  ;;  %211 = vmatprep.mubr.bf16.mxu0 %v399_v0 }
  0x1a   :  { %346 = vmatprep.subr.bf16.mxu0 %v400_v10  ;;  %340 = vmatmul.mubr.msk.bf16.vlgmr.msra.gmra.mrb[0].mxu1 %vm89_vm0, %v361_v3 }
  0x1b   :  { %223 = vmatpush1.bf16.msra.mxu1 %v368_v9  ;;  %254 = vmatprep.mubr.bf16.mxu1 %v399_v0 }
  0x20   :  { %341 = vmatmul.mubr.msk.bf16.vlgmr.msra.gmra.mrb[4].mxu0 %vm89_vm0, %v361_v3 }
  0x21   :  { %347 = vmatpush3.bf16.msra.mxu0 %v371_v11  ;;  %348 = vmatprep.mubr.msk.bf16.mxu0 %vm401_vm1, %v400_v10 }
  0x22   :  { %342 = vmatmul.mubr.msk.bf16.vlgmr.msra.gmra.mrb[4].mxu1 %vm89_vm0, %v361_v3 }
  0x28   :  { %349 = vmatmul.mubr.msk.bf16.vlgmr.msra.gmra.mrb[8].mxu0 %vm89_vm0, %v361_v3 }
  0xeb   :  { %v127_v12 = vpop.f32.mrb[0].mxu0 }
  0xec   :  { %306 = vst [vmem:[%s493_s2] sm:$0xff] %v127_v12  ;;  %v129_v13 = vpop.f32.mrb[1].mxu0 }
  0xed   :  { %307 = vst [vmem:[%s493_s2 + $0x8] sm:$0xff] %v129_v13  ;;  %v131_v14 = vpop.f32.mrb[2].mxu0  ;;  %v170_v16 = vpop.f32.mrb[0].mxu1 }
  0xee   :  { %315 = vst [vmem:[%s493_s2 + $0x48] sm:$0x1] %v131_v14  ;;  %v133_v15 = vpop.f32.mrb[3].mxu0  ;;  %308 = vst [vmem:[%s493_s2 + $0x10] sm:$0xff] %v170_v16  ;;  %v172_v17 = vpop.f32.mrb[1].mxu1 }
  0xef   :  { %316 = vst [vmem:[%s493_s2 + $0x50] sm:$0x1] %v133_v15  ;;  %309 = vst [vmem:[%s493_s2 + $0x18] sm:$0xff] %v172_v17  ;;  %v174_v18 = vpop.f32.mrb[2].mxu1 }
  0xf0   :  { %317 = vst [vmem:[%s493_s2 + $0x58] sm:$0x1] %v174_v18  ;;  %v176_v19 = vpop.f32.mrb[3].mxu1 }
  0xf1   :  { %318 = vst [vmem:[%s493_s2 + $0x60] sm:$0x1] %v176_v19 }
  0xf3   :  { %v213_v20 = vpop.f32.mrb[4].mxu0 }
  0xf4   :  { %310 = vst [vmem:[%s493_s2 + $0x20] sm:$0xff] %v213_v20  ;;  %v215_v21 = vpop.f32.mrb[5].mxu0 }
  0xf5   :  { %311 = vst [vmem:[%s493_s2 + $0x28] sm:$0xff] %v215_v21  ;;  %v217_v22 = vpop.f32.mrb[6].mxu0  ;;  %v256_v24 = vpop.f32.mrb[4].mxu1 }
  0xf6   :  { %319 = vst [vmem:[%s493_s2 + $0x68] sm:$0x1] %v217_v22  ;;  %v219_v23 = vpop.f32.mrb[7].mxu0  ;;  %312 = vst [vmem:[%s493_s2 + $0x30] sm:$0xff] %v256_v24  ;;  %v258_v25 = vpop.f32.mrb[5].mxu1 }
  0xf7   :  { %320 = vst [vmem:[%s493_s2 + $0x70] sm:$0x1] %v219_v23  ;;  %313 = vst [vmem:[%s493_s2 + $0x38] sm:$0xff] %v258_v25  ;;  %v260_v26 = vpop.f32.mrb[6].mxu1 }
  0xf8   :  { %321 = vst [vmem:[%s493_s2 + $0x78] sm:$0x1] %v260_v26  ;;  %v262_v27 = vpop.f32.mrb[7].mxu1 }
  0xf9   :  { %322 = vst [vmem:[%s493_s2 + $0x80] sm:$0x1] %v262_v27 }
  0xfb   :  { %v299_v28 = vpop.f32.mrb[8].mxu0 }
  0xfc   :  { %314 = vst [vmem:[%s493_s2 + $0x40] sm:$0xff] %v299_v28  ;;  %v350_v29 = vpop.f32.mrb[9].mxu0 }
  0xfd   :  { %v302_v30 = vpop.f32.mrb[10].mxu0 }
  0xfe   :  { %323 = vst [vmem:[%s493_s2 + $0x88] sm:$0x1] %v302_v30  ;;  %v351_v31 = vpop.f32.mrb[11].mxu0 }
  0xff   :  { %328 = vsyncpa [#allocation3], 1 }

</bundles_post_ra>
